<compile_context>
chip_gen: v5e
topology: v5e:2x2
jax: 0.10.0
libtpu: 0.0.40
codegen_flags: <defaults>
</compile_context>

<pallas_src>
import math

import jax
import jax.numpy as jnp
from jax import lax
from jax.experimental import pallas as pl
from jax.experimental.pallas import tpu as pltpu

_LANES = 128


def _round_up(a, b):
    return -(-a // b) * b


def _vmem_capacity_bytes():
    # Generation-aware budget: 128 MiB on v5e/v6e, 64 MiB per TensorCore on v7x.
    try:
        return int(pltpu.get_tpu_info().vmem_capacity_bytes)
    except Exception:
        return 64 * 1024 * 1024          # conservative (v7x-safe) default


def _pad_lane_rows(flat, rows_p):
    """Zero-pad a flat f32 vector into a lane-dense (rows_p, 128) layout."""
    n = flat.shape[0]
    pad = rows_p * _LANES - n
    if pad:
        flat = jnp.concatenate([flat, jnp.zeros((pad,), flat.dtype)])
    return flat.reshape(rows_p, _LANES)


# --------------------------------------------------------------------------
# Kernel 1: Bayesian weight sampling  w = mu + exp(log_sigma) * eps   + KL
#   lane-dense (rows_p, 128) layout (built once at init), row-tiled,
#   per-tile KL partials (grid axis is 'parallel'), reduced by XLA.
# --------------------------------------------------------------------------
def _sample_kl_kernel(mu_ref, logsig_ref, eps_ref, w_ref, kl_ref):
    mu = mu_ref[...]
    logsig = logsig_ref[...]
    eps = eps_ref[...]
    w = mu + jnp.exp(logsig) * eps
    w_ref[...] = w
    # TODO(synk): `prior.kl_div` is an external dependency not given with the
    # module; we use the standard Bayes-by-backprop Monte-Carlo KL against a
    # N(0,1) prior:  kl = sum(-log(sigma) - eps^2/2 + w^2/2).
    # Padded tail slots (mu = 0, log_sigma = 0  =>  w == eps) contribute exactly 0.
    kl_ref[0, 0] = jnp.sum(-logsig - 0.5 * eps * eps + 0.5 * w * w)


def sample_weights_and_kl(mu_pad, logsig_pad, eps_pad, *, tr):
    """All args share the zero-padded (rows_p, 128) layout; returns (w_pad, kl)."""
    rows_p, lanes = mu_pad.shape
    n_t = rows_p // tr

    w_pad, kl_parts = pl.pallas_call(
        _sample_kl_kernel,
        out_shape=(
            jax.ShapeDtypeStruct((rows_p, lanes), mu_pad.dtype),
            jax.ShapeDtypeStruct((n_t, 1), jnp.float32),
        ),
        grid_spec=pltpu.PrefetchScalarGridSpec(
            num_scalar_prefetch=0,
            grid=(n_t,),
            in_specs=[pl.BlockSpec((tr, lanes), lambda i: (i, 0))] * 3,
            out_specs=(
                pl.BlockSpec((tr, lanes), lambda i: (i, 0)),
                pl.BlockSpec((1, 1), lambda i: (i, 0),
                             memory_space=pltpu.MemorySpace.SMEM),
            ),
        ),
        compiler_params=pltpu.CompilerParams(
            dimension_semantics=("parallel",),
        ),
    )(mu_pad, logsig_pad, eps_pad)
    return w_pad, jnp.sum(kl_parts)


# --------------------------------------------------------------------------
# Kernel 2: transposed conv as K accumulated lane-dense MXU matmuls.
#   x block : (Bt, Hp, WC)    rows of the zero-dilated padded input (resident
#                             across the row-tile / column-tile grid axes)
#   w block : (K, WC, TWO)    banded weights, tiled along output columns
#   out blk : (Bt, TH, TWO)   lane-dense store; M = Bt*TH fills the MXU
# --------------------------------------------------------------------------
def _make_convt_kernel(K, d, TH, Bt, n_h):
    def kernel(x_ref, w_ref, o_ref):
        if n_h > 1:
            row0 = pl.multiple_of(pl.program_id(1) * TH, TH)
        else:
            row0 = 0

        def tap(kh):
            start = row0 + kh * d
            if Bt == 1:
                return x_ref[0, pl.ds(start, TH), :]          # (TH, WC)
            # aligned sublane stacking -> single (Bt*TH, WC) MXU operand
            return jnp.concatenate(
                [x_ref[b, pl.ds(start, TH), :] for b in range(Bt)], axis=0)

        acc = jnp.dot(tap(0), w_ref[0], preferred_element_type=jnp.float32)
        for kh in range(1, K):
            acc = acc + jnp.dot(tap(kh), w_ref[kh],
                                preferred_element_type=jnp.float32)
        acc = acc.astype(o_ref.dtype)
        if Bt == 1:
            o_ref[0] = acc
        else:
            for b in range(Bt):
                o_ref[b] = acc[b * TH:(b + 1) * TH]
    return kernel


def _convt_pallas(x2d, w_band, *, K, d, TH, Bt, n_h, n_j, TWO, out_dtype,
                  vmem_cap):
    N, Hp, WC = x2d.shape
    NB = N // Bt
    WO_pad = w_band.shape[-1]

    # Explicit VMEM budget: x & weight & out blocks (double-buffered) + f32 acc.
    xb = Bt * Hp * WC * x2d.dtype.itemsize
    wb = K * WC * TWO * w_band.dtype.itemsize
    ob = Bt * TH * TWO * jnp.dtype(out_dtype).itemsize
    acc_b = Bt * TH * TWO * 4
    need = 2 * xb + 2 * wb + 2 * ob + acc_b + (2 << 20)
    vmem_limit = int(min(max(need, 32 << 20), int(vmem_cap * 0.94)))

    return pl.pallas_call(
        _make_convt_kernel(K, d, TH, Bt, n_h),
        out_shape=jax.ShapeDtypeStruct((N, n_h * TH, WO_pad), out_dtype),
        grid_spec=pltpu.PrefetchScalarGridSpec(
            num_scalar_prefetch=0,
            grid=(NB, n_h, n_j),
            in_specs=[
                # x: fetched once per batch block, stays resident across (t, j)
                pl.BlockSpec((Bt, Hp, WC), lambda b, t, j: (b, 0, 0)),
                # weights: output-column tiled; n_j == 1 => effectively resident
                pl.BlockSpec((K, WC, TWO), lambda b, t, j: (0, 0, j)),
            ],
            out_specs=pl.BlockSpec((Bt, TH, TWO), lambda b, t, j: (b, t, j)),
        ),
        compiler_params=pltpu.CompilerParams(
            dimension_semantics=("parallel", "parallel", "parallel"),
            vmem_limit_bytes=vmem_limit,
        ),
    )(x2d, w_band)


def _band_weights(w_mat, *, K, d, Cin, Cout, Wp_pad, W_out, WO_pad, dtype):
    """w_mat: (K*K*Cin, Cout) flipped-tap weights -> banded (K, Wp_pad*Cin, WO_pad).

    band[kh][wp*Cin + ci, w*Cout + co] = w_mat[(kh*K + kw)*Cin + ci, co]
                                         iff wp == w + kw*d  (zero elsewhere,
                                         including the Wp / WO padding).
    """
    # TODO(synk): for K*K*Cin >= ~128-256 an im2col-style (H*W, K*K*Cin)
    # contraction (no ~Wp/K FLOP & weight-byte inflation) should replace this
    # banded path; not exercised at the demo's K*K*Cin = 36.
    w_taps = w_mat.reshape(K, K, Cin, Cout)                       # [kh, kw, ci, co]
    eyes = jnp.stack(
        [jnp.eye(Wp_pad, W_out, k=-kw * d, dtype=w_mat.dtype) for kw in range(K)])
    band = jnp.einsum('kpw,hkcf->hpcwf', eyes, w_taps)            # (K,Wp,Cin,W,Cout)
    band = band.reshape(K, Wp_pad * Cin, W_out * Cout)
    if WO_pad > W_out * Cout:
        band = jnp.pad(band, ((0, 0), (0, 0), (0, WO_pad - W_out * Cout)))
    return band.astype(dtype)


# --------------------------------------------------------------------------
# Module wrapper (mirrors BConvTranspose.__init__ / forward, dim=2, bias=False)
# --------------------------------------------------------------------------
class BConvTransposePallas:
    def __init__(self, key, var_init, in_channels, out_channels, kernel_size,
                 stride=1, padding=0, dilation=1, groups=1, bias=False,
                 output_padding=0, dim=2, compute_dtype=None):
        assert dim == 2, "this synthetic kernel implements the 2-D instantiation"
        assert groups == 1
        assert not bias          # bias=False is the module default (mu_bias is None)
        self.in_channels = in_channels
        self.out_channels = out_channels
        self.kernel_size = kernel_size
        self.stride = stride
        self.padding = padding
        self.dilation = dilation
        self.output_padding = output_padding
        # Set to jnp.bfloat16 on v6e/v7x (f32 accumulation is kept) if tolerance allows.
        self.compute_dtype = compute_dtype

        # reset_parameters(): mu ~ U(-stdv, stdv), sigma_weight = log(var_init).
        # Parameters are stored ONCE, at init, in the lane-dense padded
        # (rows_p, 128) layout kernel 1 consumes; the logical layout is the
        # flipped (K*K*Cin, Cout) matmul layout the conv kernel consumes
        # (i.i.d. init => same distribution as the PyTorch (Cin,Cout,K,K) layout).
        n = in_channels * kernel_size ** dim
        stdv = 1.0 / math.sqrt(n)
        self._wshape = (kernel_size * kernel_size * in_channels, out_channels)
        self._n_param = self._wshape[0] * self._wshape[1]
        rows = -(-self._n_param // _LANES)
        self._tr = 512 if rows >= 512 else _round_up(rows, 8)
        self._rows_p = _round_up(rows, self._tr)

        mu = jax.random.uniform(key, self._wshape, jnp.float32,
                                minval=-stdv, maxval=stdv)
        sig = jnp.full(self._wshape, math.log(var_init), jnp.float32)
        self.mu_weight = _pad_lane_rows(mu.reshape(-1), self._rows_p)
        self.sigma_weight = _pad_lane_rows(sig.reshape(-1), self._rows_p)

    def _crop(self, a_pad):
        """Padded (rows_p, 128) layout -> logical (K*K*Cin, Cout) matrix."""
        return a_pad.reshape(-1)[:self._n_param].reshape(self._wshape)

    def __call__(self, x, eps_key):
        Cin, Cout, K = self.in_channels, self.out_channels, self.kernel_size
        s, p, d, op = self.stride, self.padding, self.dilation, self.output_padding

        # --- Pallas kernel 1: sample weights + KL ---
        eps_pad = jax.random.normal(eps_key, (self._rows_p, _LANES), jnp.float32)
        w_pad, kl = sample_weights_and_kl(self.mu_weight, self.sigma_weight,
                                          eps_pad, tr=self._tr)
        w_mat = self._crop(w_pad)

        # --- conv_transpose2d == VALID conv over the zero-dilated, padded input ---
        N, _, H, W = x.shape
        halo = d * (K - 1)
        pad_lo = halo - p                       # negative (crop) when p > d*(K-1)
        pad_hi = pad_lo + op
        Hp0 = (H - 1) * s + 1 + pad_lo + pad_hi
        Wp0 = (W - 1) * s + 1 + pad_lo + pad_hi
        H_out, W_out = Hp0 - halo, Wp0 - halo

        # lane axis: pad Wp so WC = Wp*Cin is a multiple of 128 (unmasked loads,
        # full MXU contraction passes); output columns padded to a multiple of 128.
        step_w = 128 // math.gcd(Cin, 128)
        Wp_pad = _round_up(Wp0, step_w)
        WC = Wp_pad * Cin
        WO = W_out * Cout
        WO_pad = _round_up(WO, 128)

        cdt = jnp.dtype(self.compute_dtype) if self.compute_dtype else jnp.dtype(x.dtype)
        vmem_cap = _vmem_capacity_bytes()

        # --- tiling: fill the MXU M dim (Bt*TH ~ 256), cap the f32 accumulator
        #     (~128 KiB), keep stores lane-dense, bound weight residency by the
        #     generation's actual VMEM capacity ---
        m_pref = 256
        if H_out >= m_pref:
            TH, Bt = m_pref, 1
        else:
            TH = _round_up(H_out, 8)
            bt_cap = max(1, m_pref // TH)
            Bt = 1
            for c in range(1, min(N, bt_cap) + 1):
                if N % c == 0 and 2 * c * (TH + halo) * WC * cdt.itemsize <= vmem_cap // 2:
                    Bt = c
        n_h = -(-H_out // TH)
        NB = N // Bt
        m_rows = Bt * TH
        # TODO(synk): for very tall images (Bt==1 and Hp*WC*2 beyond the VMEM
        # budget) switch x to memory_space=pl.ANY with manual halo-window DMAs.

        acc_cap = 128 * 1024                    # f32 accumulator bytes (~32 vregs)
        w_budget = vmem_cap // 4
        TWO = 128
        for f in range(1, WO_pad // 128 + 1):
            if (WO_pad // 128) % f:
                continue
            cand = f * 128
            if cand > 128 and m_rows * cand * 4 > acc_cap:
                continue
            if 2 * K * WC * cand * cdt.itemsize > w_budget:
                continue
            TWO = max(TWO, cand)
        n_j = WO_pad // TWO

        # --- padded, lane-dense activation rows: ONE fused pad (row-tile and
        #     lane padding folded in), compute-dtype cast folded in, no halo
        #     duplication on the host ---
        # TODO(synk): accept/return NHWC directly to drop these two layout transposes.
        x_nhwc = jnp.transpose(x, (0, 2, 3, 1)).astype(cdt)       # N,H,W,Cin
        Hp = n_h * TH + halo
        x_padded = lax.pad(
            x_nhwc, jnp.zeros((), cdt),
            ((0, 0, 0),
             (pad_lo, pad_hi + (Hp - Hp0), s - 1),
             (pad_lo, pad_hi + (Wp_pad - Wp0), s - 1),
             (0, 0, 0)),
        )
        x2d = x_padded.reshape(N, Hp, WC)                         # free reshape

        # Banded weights: (kw, ci) folded onto the lane/contraction axis.
        w_band = _band_weights(w_mat, K=K, d=d, Cin=Cin, Cout=Cout,
                               Wp_pad=Wp_pad, W_out=W_out, WO_pad=WO_pad,
                               dtype=cdt)

        out = _convt_pallas(x2d, w_band, K=K, d=d, TH=TH, Bt=Bt, n_h=n_h,
                            n_j=n_j, TWO=TWO, out_dtype=x.dtype,
                            vmem_cap=vmem_cap)
        out = out[:, :H_out, :WO].reshape(N, H_out, W_out, Cout)  # crop padding
        out = jnp.transpose(out, (0, 3, 1, 2))                    # NHWC -> NCHW

        # bias=False  ->  bias_kl = 0
        return out, kl


if __name__ == "__main__":
    key = jax.random.PRNGKey(0)
    k_init, k_x, k_eps = jax.random.split(key, 3)

    layer = BConvTransposePallas(
        k_init, var_init=0.05,
        in_channels=4, out_channels=8, kernel_size=3,
        stride=2, padding=1, output_padding=1, dim=2,
    )
    x = jax.random.normal(k_x, (2, 4, 16, 16), jnp.float32)

    out, kl = layer(x, k_eps)
    out, kl = jax.block_until_ready((out, kl))

    assert out.shape == (2, 8, 32, 32), out.shape
    assert bool(jnp.isfinite(kl)), kl

    # sanity check against XLA's dilated conv (same conv_transpose semantics,
    # same sampled weights: eps is regenerated from the same key / padded shape).
    K, Cin, Cout = layer.kernel_size, layer.in_channels, layer.out_channels
    eps_pad = jax.random.normal(k_eps, (layer._rows_p, _LANES), jnp.float32)
    eps = layer._crop(eps_pad)
    w_mat = layer._crop(layer.mu_weight) + \
        jnp.exp(layer._crop(layer.sigma_weight)) * eps
    rhs = jnp.transpose(w_mat.reshape(K, K, Cin, Cout), (3, 2, 0, 1))  # (Cout,Cin,K,K)
    ref = lax.conv_general_dilated(
        x, rhs, window_strides=(1, 1),
        padding=((1, 2), (1, 2)),
        lhs_dilation=(2, 2), rhs_dilation=(1, 1),
        dimension_numbers=("NCHW", "OIHW", "NCHW"),
    )
    assert jnp.allclose(out, ref, atol=1e-2, rtol=1e-2), \
        float(jnp.max(jnp.abs(out - ref)))

    print("KERNEL_OK")
</pallas_src>

<mosaic_0001>
module attributes {stable_mosaic.version = 11 : i64} {
  func.func @_sample_kl_kernel(%arg0: i32, %arg1: memref<8x128xf32, #tpu.memory_space<vmem>>, %arg2: memref<8x128xf32, #tpu.memory_space<vmem>>, %arg3: memref<8x128xf32, #tpu.memory_space<vmem>>, %arg4: memref<8x128xf32, #tpu.memory_space<vmem>>, %arg5: memref<1x1xf32, #tpu.memory_space<smem>>) attributes {dimension_semantics = [#tpu.dimension_semantics<parallel>], iteration_bounds = array<i64: 1>, scalar_prefetch = 0 : i64, scratch_operands = 0 : i64, tpu.core_type = #tpu.core_type<tc>, window_params = [{transform_indices = @transform_0, window_bounds = array<i64: 8, 128>}, {transform_indices = @transform_1, window_bounds = array<i64: 8, 128>}, {transform_indices = @transform_2, window_bounds = array<i64: 8, 128>}, {transform_indices = @transform_3, window_bounds = array<i64: 8, 128>}, {transform_indices = @transform_4, window_bounds = array<i64: 1, 1>}]} {
    %c0 = arith.constant 0 : index
    %c0_0 = arith.constant 0 : index
    %0 = vector.load %arg1[%c0, %c0_0] : memref<8x128xf32, #tpu.memory_space<vmem>>, vector<8x128xf32>
    %c0_1 = arith.constant 0 : index
    %c0_2 = arith.constant 0 : index
    %1 = vector.load %arg2[%c0_1, %c0_2] : memref<8x128xf32, #tpu.memory_space<vmem>>, vector<8x128xf32>
    %c0_3 = arith.constant 0 : index
    %c0_4 = arith.constant 0 : index
    %2 = vector.load %arg3[%c0_3, %c0_4] : memref<8x128xf32, #tpu.memory_space<vmem>>, vector<8x128xf32>
    %3 = math.exp %1 : vector<8x128xf32>
    %4 = arith.mulf %3, %2 : vector<8x128xf32>
    %5 = arith.addf %0, %4 : vector<8x128xf32>
    %c0_5 = arith.constant 0 : index
    %c0_6 = arith.constant 0 : index
    %6 = vector.load %arg4[%c0_5, %c0_6] : memref<8x128xf32, #tpu.memory_space<vmem>>, vector<8x128xf32>
    tpu.vector_store %arg4[%c0_5, %c0_6], %5 {strides = array<i32>} : memref<8x128xf32, #tpu.memory_space<vmem>>, vector<8x128xf32>,
    %cst = arith.constant 0.000000e+00 : f32
    %7 = vector.broadcast %cst : f32 to vector<8x128xf32>
    %8 = arith.subf %7, %1 : vector<8x128xf32>
    %cst_7 = arith.constant 5.000000e-01 : f32
    %9 = vector.broadcast %cst_7 : f32 to vector<8x128xf32>
    %10 = arith.mulf %9, %2 : vector<8x128xf32>
    %11 = arith.mulf %10, %2 : vector<8x128xf32>
    %12 = arith.subf %8, %11 : vector<8x128xf32>
    %cst_8 = arith.constant 5.000000e-01 : f32
    %13 = vector.broadcast %cst_8 : f32 to vector<8x128xf32>
    %14 = arith.mulf %13, %5 : vector<8x128xf32>
    %15 = arith.mulf %14, %5 : vector<8x128xf32>
    %16 = arith.addf %12, %15 : vector<8x128xf32>
    %17 = vector.shape_cast %16 : vector<8x128xf32> to vector<1x8x128xf32>
    %cst_9 = arith.constant dense<0.000000e+00> : vector<1xf32>
    %18 = vector.multi_reduction <add>, %17, %cst_9 [1, 2] : vector<1x8x128xf32> to vector<1xf32>
    %19 = vector.shape_cast %18 : vector<1xf32> to vector<1x1x1xf32>
    %20 = vector.extract %19[0, 0, 0] : f32 from vector<1x1x1xf32>
    %c0_10 = arith.constant 0 : index
    %c0_11 = arith.constant 0 : index
    %21 = memref.load %arg5[%c0_10, %c0_11] : memref<1x1xf32, #tpu.memory_space<smem>>
    memref.store %20, %arg5[%c0_10, %c0_11] : memref<1x1xf32, #tpu.memory_space<smem>>
    return
  }
  func.func @transform_0(%arg0: i32) -> (i32, i32) {
    %c0_i32 = arith.constant 0 : i32
    %c0_i32_0 = arith.constant 0 : i32
    return %arg0, %c0_i32 : i32, i32
  }
  func.func @transform_1(%arg0: i32) -> (i32, i32) {
    %c0_i32 = arith.constant 0 : i32
    %c0_i32_0 = arith.constant 0 : i32
    return %arg0, %c0_i32 : i32, i32
  }
  func.func @transform_2(%arg0: i32) -> (i32, i32) {
    %c0_i32 = arith.constant 0 : i32
    %c0_i32_0 = arith.constant 0 : i32
    return %arg0, %c0_i32 : i32, i32
  }
  func.func @transform_3(%arg0: i32) -> (i32, i32) {
    %c0_i32 = arith.constant 0 : i32
    %c0_i32_0 = arith.constant 0 : i32
    return %arg0, %c0_i32 : i32, i32
  }
  func.func @transform_4(%arg0: i32) -> (i32, i32) {
    %c0_i32 = arith.constant 0 : i32
    %c0_i32_0 = arith.constant 0 : i32
    return %arg0, %c0_i32 : i32, i32
  }
}

</mosaic_0001>

<bundles_post_ra>
// kernel: tpu_custom_call.1
= control target key start
LH: loop header
LB: loop body
LE: loop exit
PB: predicated region body
PF: predicated region fallthrough
CT: control target
= control target key end

     0   :  { %10 = vsyncpa [#allocation3], 0  ;;  %s288_s0 = inlined_call_operand.hbm [shape: f32[8,128], index: 0, kind: input, shape index: {}]   ;;  %s289_s1 = inlined_call_operand.hbm [shape: f32[8,128], index: 1, kind: input, shape index: {}]   ;;  %s290_s2 = inlined_call_operand.hbm [shape: f32[8,128], index: 2, kind: input, shape index: {}]   ;;  %s291_s3 = inlined_call_operand.hbm [shape: f32[8,128], index: 3, kind: output, shape index: {0}]   ;;  %s292_s4 = inlined_call_operand.hbm [shape: f32[1,1], index: 4, kind: output, shape index: {1}]  }
   0x1   :  { %11 = vsyncpa [#allocation7], 0 }
   0x2   :  { %12 = vsyncpa [#allocation4], 0  ;;  %s30_s17 = sshll.u32 %s289_s1, 4  ;;  %s31_s17 = int_to_ptr.hbm [resolvable:$true] %s30_s17 }
   0x3   :  { %13 = vsyncpa [#allocation5], 0  ;;  %s243_s18 = smov [#allocation6]   ;;  %s19_s22 = sshll.u32 %s288_s0, 4  ;;  %s20_s22 = int_to_ptr.hbm [resolvable:$true] %s19_s22 }
   0x4   :  { %s32_s19 = sshll.u32 %s243_s18, 4  ;;  %s244_s23 = smov [#allocation2]   ;;  %s33_s19 = int_to_ptr.vmem [resolvable:$true] %s32_s19 }
   0x5   :  { %35 = dma.hbm_to_vmem [thread:$0]  %s31_s17, 128, %s33_s19, [#allocation7]  }
   0x6   :  { %s21_s24 = sshll.u32 %s244_s23, 4  ;;  %s41_s27 = sshll.u32 %s290_s2, 4  ;;  %s22_s24 = int_to_ptr.vmem [resolvable:$true] %s21_s24  ;;  %s42_s27 = int_to_ptr.hbm [resolvable:$true] %s41_s27 }
   0x7   :  { %24 = dma.hbm_to_vmem [thread:$0]  %s20_s22, 128, %s22_s24, [#allocation3]  }
   0x8   :  { %s245_s1 = smov [#allocation8]  }
   0x9   :  { %s43_s28 = sshll.u32 %s245_s1, 4  ;;  %s44_s28 = int_to_ptr.vmem [resolvable:$true] %s43_s28 }
   0xa   :  { %46 = dma.hbm_to_vmem [thread:$0]  %s42_s27, 128, %s44_s28, [#allocation7]  }
   0xb   :  { %235 = dma.done.wait [#allocation3], 128  }
   0xc   :  { %236 = vsyncadd [#allocation3], 4294967168 }
   0xd   :  { %237 = dma.done.wait [#allocation7], 256  }
   0xe   :  { %238 = vsyncadd [#allocation7], 4294967040  ;;  %v60_v0 = vld [vmem:[#allocation6] sm:$0xff]  ;;  %v61_v2 = vld [vmem:[#allocation8] sm:$0xff]  ;;  %s246_s0 = smov [#allocation9]   ;;  %s92_s5 = sshll.u32 %s291_s3, 4  ;;  %s93_s5 = int_to_ptr.hbm [resolvable:$true] %s92_s5 }
   0xf   :  { %v62_v1 = vmul.f32 1.442695, %v60_v0  ;;  %v68_v3 = vmul.f32 0.5, %v61_v2  ;;  %v59_v5 = vld [vmem:[#allocation2] sm:$0xff]  ;;  %v67_v7 = vsub.f32 0.0, %v60_v0  ;;  %s90_s2 = sshll.u32 %s246_s0, 4  ;;  %s91_s2 = int_to_ptr.vmem [resolvable:$true] %s90_s2 }
  0x10   :  { %s101_s8 = sshll.u32 %s292_s4, 4  ;;  %s247_s10 = smov [#allocation10]   ;;  %s102_s8 = int_to_ptr.hbm [resolvable:$true] %s101_s8 }
  0x11   :  { %125 = vpow2.f32 %v62_v1  ;;  %v69_v8 = vmul.f32 %v68_v3, %v61_v2 }
  0x13   :  { %v70_v10 = vsub.f32 %v67_v7, %v69_v8 }
  0x17   :  { %v126_v4 = vpop.eup %125 }
  0x18   :  { %v64_v6 = vmul.f32 %v126_v4, %v61_v2 }
  0x1a   :  { %v65_v9 = vadd.f32 %v64_v6, %v59_v5 }
  0x1c   :  { %v71_v11 = vmul.f32 0.5, %v65_v9  ;;  %66 = vst [vmem:[#allocation9] sm:$0xff] %v65_v9 }
  0x1d   :  { %95 = dma.vmem_to_hbm [thread:$0]  %s91_s2, 128, %s93_s5, [#allocation4]  }
  0x1e   :  { %v72_v12 = vmul.f32 %v71_v11, %v65_v9 }
  0x20   :  { %v73_v13 = vadd.f32 %v72_v12, %v70_v10 }
  0x22   :  { %74 = vadd.xlane.f32.xlu0 %v73_v13 }
  0x95   :  { %v75_v14 = vpop.xlane.xlu0 %74 }
  0x96   :  { %v76_v15 = vrot.slane %v75_v14, 4 }
  0x98   :  { %v77_v16 = vadd.f32 %v76_v15, %v75_v14 }
  0x9a   :  { %v78_v17 = vrot.slane %v77_v16, 2 }
  0x9c   :  { %v79_v18 = vadd.f32 %v78_v17, %v77_v16 }
  0x9e   :  { %v80_v19 = vrot.slane %v79_v18, 1 }
  0xa0   :  { %v81_v20 = vadd.f32 %v80_v19, %v79_v18 }
  0xa2   :  { %118 = vpush %v81_v20 }
  0xd3   :  { %s119_s9 = spop %118 }
  0xd4   :  { %84 = sst [smem:[#allocation10]] %s119_s9 }
  0xd5   :  { %104 = dma.smem_to_hbm %s247_s10, 16, %s102_s8, [#allocation5]  }
  0xd6   :  { %239 = dma.done.wait [#allocation4], 128  }
  0xd7   :  { %240 = vsyncadd [#allocation4], 4294967168 }
  0xd8   :  { %241 = dma.done.wait [#allocation5], 16  }
  0xd9   :  { %242 = vsyncadd [#allocation5], 4294967280 }
  0xda   :  { %113 = sfence }
  0xdb   :  { %114 = vsyncpa [#allocation3], 1 }
  0xdc   :  { %115 = vsyncpa [#allocation7], 1 }
  0xdd   :  { %116 = vsyncpa [#allocation4], 1 }
  0xde   :  { %117 = vsyncpa [#allocation5], 1 }

</bundles_post_ra>
